<compile_context>
chip_gen: v7x
topology: tpu7x:2x2x1
jax: 0.10.0
libtpu: 0.0.40
codegen_flags: <defaults>
</compile_context>

<pallas_src>
import functools

import jax
import jax.numpy as jnp
from jax.experimental import pallas as pl
from jax.experimental.pallas import tpu as pltpu


def _wbce_kernel(x_ref, t_ref, out_ref, *,
                 w_pos: float, w_neg: float,
                 tile_rows: int, lanes: int, n_valid_in_last: int):
    i = pl.program_id(0)
    last = pl.num_programs(0) - 1

    x = x_ref[...].astype(jnp.float32)
    t = t_ref[...].astype(jnp.float32)

    # Exact module semantics: sigmoid + log(p + 1e-8).
    probs = jax.nn.sigmoid(x)
    loss = -(w_pos * t * jnp.log(probs + 1e-8)
             + w_neg * (1.0 - t) * jnp.log(1.0 - probs + 1e-8))

    def reduce_rows(v):
        # (tile_rows, lanes) -> (8, lanes) partial sums; the reshape is a
        # free sublane regrouping, the sum is pure VPU vadds.
        return jnp.sum(v.reshape(tile_rows // 8, 8, lanes), axis=0)

    # Steady-state blocks contain no padding: skip the mask entirely.
    @pl.when(i < last)
    def _():
        out_ref[0] = reduce_rows(loss)

    # Only the last block can contain padded / out-of-bounds elements: mask
    # them there (select, so garbage values in OOB rows cannot leak through).
    @pl.when(i == last)
    def _():
        row = jax.lax.broadcasted_iota(jnp.int32, loss.shape, 0)
        lane = jax.lax.broadcasted_iota(jnp.int32, loss.shape, 1)
        flat_local = row * lanes + lane
        masked = jnp.where(flat_local < n_valid_in_last, loss, 0.0)
        out_ref[0] = reduce_rows(masked)


def weighted_bce_loss(inputs, targets, abnormal_count, normal_count, *,
                      lanes: int = 512, max_tile_rows: int = 1024):
    assert lanes % 128 == 0 and max_tile_rows % 8 == 0

    total = abnormal_count + normal_count
    w_pos = float(normal_count) / float(total)
    w_neg = float(abnormal_count) / float(total)

    # torch: mean over all elements (the unsqueeze only adds a size-1 dim),
    # so flattening preserves semantics exactly.
    n_elems = int(inputs.size)
    x = inputs.reshape(-1)
    t = targets.reshape(-1)

    # Lane-dense 2-D slab: (rows, lanes) with lanes a multiple of 128.
    # Rows are padded only to a multiple of 8 (sublane alignment); the last
    # grid block may be ragged — Pallas pads OOB reads and the kernel masks.
    n_rows = pl.cdiv(n_elems, lanes)
    n_rows_pad = ((n_rows + 7) // 8) * 8
    tile_rows = min(max_tile_rows, n_rows_pad)
    grid_size = pl.cdiv(n_rows_pad, tile_rows)

    pad = n_rows_pad * lanes - n_elems
    if pad:
        x = jnp.pad(x, (0, pad))
        t = jnp.pad(t, (0, pad))
    x = x.reshape(n_rows_pad, lanes)
    t = t.reshape(n_rows_pad, lanes)

    # All padding (jnp.pad zeros + ragged OOB rows) lives in the last block.
    n_valid_in_last = n_elems - (grid_size - 1) * tile_rows * lanes

    kernel = functools.partial(
        _wbce_kernel,
        w_pos=w_pos, w_neg=w_neg,
        tile_rows=tile_rows, lanes=lanes,
        n_valid_in_last=n_valid_in_last,
    )

    partials = pl.pallas_call(
        kernel,
        out_shape=jax.ShapeDtypeStruct((grid_size, 8, lanes), jnp.float32),
        grid_spec=pltpu.PrefetchScalarGridSpec(
            num_scalar_prefetch=0,
            grid=(grid_size,),
            in_specs=[
                pl.BlockSpec((tile_rows, lanes), lambda i: (i, 0)),
                pl.BlockSpec((tile_rows, lanes), lambda i: (i, 0)),
            ],
            out_specs=pl.BlockSpec((1, 8, lanes), lambda i: (i, 0, 0)),
        ),
        compiler_params=pltpu.CompilerParams(
            dimension_semantics=("parallel",)),
    )(x, t)

    # Tiny final cross-lane/block reduce + mean outside the kernel.
    return jnp.sum(partials) / jnp.float32(n_elems)


def _reference(inputs, targets, abnormal_count, normal_count):
    total = abnormal_count + normal_count
    w_pos = normal_count / total
    w_neg = abnormal_count / total
    if inputs.ndim == 1:
        inputs = inputs[:, None]
    if targets.ndim == 1:
        targets = targets[:, None]
    probs = jax.nn.sigmoid(inputs.astype(jnp.float32))
    t = targets.astype(jnp.float32)
    loss = -(w_pos * t * jnp.log(probs + 1e-8)
             + w_neg * (1.0 - t) * jnp.log(1.0 - probs + 1e-8))
    return jnp.mean(loss)


if __name__ == "__main__":
    abnormal_count = 30
    normal_count = 70

    key = jax.random.PRNGKey(0)
    k1, k2, k3, k4, k5, k6 = jax.random.split(key, 6)

    # Small 1-D batch of logits/labels, as the module's forward implies.
    n = 16
    logits = jax.random.normal(k1, (n,), dtype=jnp.float32)
    labels = (jax.random.uniform(k2, (n,)) > 0.5).astype(jnp.float32)

    loss = weighted_bce_loss(logits, labels, abnormal_count, normal_count)
    loss = jax.block_until_ready(loss)
    ref = _reference(logits, labels, abnormal_count, normal_count)
    assert jnp.allclose(loss, ref, atol=1e-6, rtol=1e-6), (loss, ref)

    # Secondary check: multi-step grid + last-block mask path (padded rows
    # divide the tile evenly here, so no ragged block).
    n2 = 10_000
    logits2 = jax.random.normal(k3, (n2,), dtype=jnp.float32)
    labels2 = (jax.random.uniform(k4, (n2,)) > 0.5).astype(jnp.float32)
    loss2 = weighted_bce_loss(logits2, labels2, abnormal_count, normal_count,
                              max_tile_rows=8)
    loss2 = jax.block_until_ready(loss2)
    ref2 = _reference(logits2, labels2, abnormal_count, normal_count)
    assert jnp.allclose(loss2, ref2, atol=1e-6, rtol=1e-5), (loss2, ref2)

    # Tertiary check: ragged last block (tile_rows does not divide the padded
    # row count, so the final block reads Pallas-padded OOB rows -> masked).
    n3 = 12_000
    logits3 = jax.random.normal(k5, (n3,), dtype=jnp.float32)
    labels3 = (jax.random.uniform(k6, (n3,)) > 0.5).astype(jnp.float32)
    loss3 = weighted_bce_loss(logits3, labels3, abnormal_count, normal_count,
                              max_tile_rows=16)
    loss3 = jax.block_until_ready(loss3)
    ref3 = _reference(logits3, labels3, abnormal_count, normal_count)
    assert jnp.allclose(loss3, ref3, atol=1e-6, rtol=1e-5), (loss3, ref3)

    print("KERNEL_OK")
</pallas_src>

<mosaic_0001>
module attributes {stable_mosaic.version = 11 : i64} {
  func.func @_wbce_kernel(%arg0: i32, %arg1: memref<8x512xf32, #tpu.memory_space<vmem>>, %arg2: memref<8x512xf32, #tpu.memory_space<vmem>>, %arg3: memref<1x8x512xf32, #tpu.memory_space<vmem>>) attributes {dimension_semantics = [#tpu.dimension_semantics<parallel>], iteration_bounds = array<i64: 1>, scalar_prefetch = 0 : i64, scratch_operands = 0 : i64, tpu.core_type = #tpu.core_type<tc>, window_params = [{transform_indices = @transform_0, window_bounds = array<i64: 8, 512>}, {transform_indices = @transform_1, window_bounds = array<i64: 8, 512>}, {transform_indices = @transform_2, window_bounds = array<i64: 1, 8, 512>}]} {
    %c0 = arith.constant 0 : index
    %c0_0 = arith.constant 0 : index
    %0 = vector.load %arg1[%c0, %c0_0] : memref<8x512xf32, #tpu.memory_space<vmem>>, vector<8x512xf32>
    %c0_1 = arith.constant 0 : index
    %c0_2 = arith.constant 0 : index
    %1 = vector.load %arg2[%c0_1, %c0_2] : memref<8x512xf32, #tpu.memory_space<vmem>>, vector<8x512xf32>
    %2 = arith.negf %0 : vector<8x512xf32>
    %3 = math.exp %2 : vector<8x512xf32>
    %cst = arith.constant 1.000000e+00 : f32
    %4 = vector.broadcast %cst : f32 to vector<8x512xf32>
    %5 = arith.addf %4, %3 : vector<8x512xf32>
    %6 = arith.divf %4, %5 : vector<8x512xf32>
    %cst_3 = arith.constant 0.699999988 : f32
    %7 = vector.broadcast %cst_3 : f32 to vector<8x512xf32>
    %8 = arith.mulf %7, %1 : vector<8x512xf32>
    %cst_4 = arith.constant 9.99999993E-9 : f32
    %9 = vector.broadcast %cst_4 : f32 to vector<8x512xf32>
    %10 = arith.addf %6, %9 : vector<8x512xf32>
    %11 = math.log %10 : vector<8x512xf32>
    %12 = arith.mulf %8, %11 : vector<8x512xf32>
    %cst_5 = arith.constant 1.000000e+00 : f32
    %13 = vector.broadcast %cst_5 : f32 to vector<8x512xf32>
    %14 = arith.subf %13, %1 : vector<8x512xf32>
    %cst_6 = arith.constant 3.000000e-01 : f32
    %15 = vector.broadcast %cst_6 : f32 to vector<8x512xf32>
    %16 = arith.mulf %15, %14 : vector<8x512xf32>
    %cst_7 = arith.constant 1.000000e+00 : f32
    %17 = vector.broadcast %cst_7 : f32 to vector<8x512xf32>
    %18 = arith.subf %17, %6 : vector<8x512xf32>
    %cst_8 = arith.constant 9.99999993E-9 : f32
    %19 = vector.broadcast %cst_8 : f32 to vector<8x512xf32>
    %20 = arith.addf %18, %19 : vector<8x512xf32>
    %21 = math.log %20 : vector<8x512xf32>
    %22 = arith.mulf %16, %21 : vector<8x512xf32>
    %23 = arith.addf %12, %22 : vector<8x512xf32>
    %cst_9 = arith.constant 0.000000e+00 : f32
    %24 = vector.broadcast %cst_9 : f32 to vector<8x512xf32>
    %25 = arith.subf %24, %23 : vector<8x512xf32>
    %c0_i32 = arith.constant 0 : i32
    %26 = arith.cmpi slt, %arg0, %c0_i32 : i32
    %27 = arith.extui %26 : i1 to i32
    %c0_i32_10 = arith.constant 0 : i32
    %28 = arith.cmpi ne, %27, %c0_i32_10 : i32
    scf.if %28 {
      %32 = vector.shape_cast %25 : vector<8x512xf32> to vector<1x8x512xf32>
      %cst_13 = arith.constant dense<0.000000e+00> : vector<8x512xf32>
      %33 = vector.multi_reduction <add>, %32, %cst_13 [0] : vector<1x8x512xf32> to vector<8x512xf32>
      %c0_14 = arith.constant 0 : index
      %c0_15 = arith.constant 0 : index
      %c0_16 = arith.constant 0 : index
      %34 = vector.load %arg3[%c0_14, %c0_15, %c0_16] : memref<1x8x512xf32, #tpu.memory_space<vmem>>, vector<1x8x512xf32>
      %35 = vector.shape_cast %34 : vector<1x8x512xf32> to vector<8x512xf32>
      %36 = vector.shape_cast %33 : vector<8x512xf32> to vector<1x8x512xf32>
      tpu.vector_store %arg3[%c0_14, %c0_15, %c0_16], %36 {strides = array<i32>} : memref<1x8x512xf32, #tpu.memory_space<vmem>>, vector<1x8x512xf32>,
    } else {
    }
    %c0_i32_11 = arith.constant 0 : i32
    %29 = arith.cmpi eq, %arg0, %c0_i32_11 : i32
    %30 = arith.extui %29 : i1 to i32
    %c0_i32_12 = arith.constant 0 : i32
    %31 = arith.cmpi ne, %30, %c0_i32_12 : i32
    scf.if %31 {
      %32 = tpu.iota {dimensions = array<i32: 0>} : vector<8x512xi32>
      %33 = tpu.iota {dimensions = array<i32: 1>} : vector<8x512xi32>
      %c512_i32 = arith.constant 512 : i32
      %34 = vector.broadcast %c512_i32 : i32 to vector<8x512xi32>
      %35 = arith.muli %32, %34 : vector<8x512xi32>
      %36 = arith.addi %35, %33 : vector<8x512xi32>
      %c16_i32 = arith.constant 16 : i32
      %37 = vector.broadcast %c16_i32 : i32 to vector<8x512xi32>
      %38 = arith.cmpi slt, %36, %37 : vector<8x512xi32>
      %cst_13 = arith.constant 0.000000e+00 : f32
      %39 = vector.broadcast %cst_13 : f32 to vector<8x512xf32>
      %40 = arith.select %38, %25, %39 : vector<8x512xi1>, vector<8x512xf32>
      %41 = vector.shape_cast %40 : vector<8x512xf32> to vector<1x8x512xf32>
      %cst_14 = arith.constant dense<0.000000e+00> : vector<8x512xf32>
      %42 = vector.multi_reduction <add>, %41, %cst_14 [0] : vector<1x8x512xf32> to vector<8x512xf32>
      %c0_15 = arith.constant 0 : index
      %c0_16 = arith.constant 0 : index
      %c0_17 = arith.constant 0 : index
      %43 = vector.load %arg3[%c0_15, %c0_16, %c0_17] : memref<1x8x512xf32, #tpu.memory_space<vmem>>, vector<1x8x512xf32>
      %44 = vector.shape_cast %43 : vector<1x8x512xf32> to vector<8x512xf32>
      %45 = vector.shape_cast %42 : vector<8x512xf32> to vector<1x8x512xf32>
      tpu.vector_store %arg3[%c0_15, %c0_16, %c0_17], %45 {strides = array<i32>} : memref<1x8x512xf32, #tpu.memory_space<vmem>>, vector<1x8x512xf32>,
    } else {
    }
    return
  }
  func.func @transform_0(%arg0: i32) -> (i32, i32) {
    %c0_i32 = arith.constant 0 : i32
    %c0_i32_0 = arith.constant 0 : i32
    return %arg0, %c0_i32 : i32, i32
  }
  func.func @transform_1(%arg0: i32) -> (i32, i32) {
    %c0_i32 = arith.constant 0 : i32
    %c0_i32_0 = arith.constant 0 : i32
    return %arg0, %c0_i32 : i32, i32
  }
  func.func @transform_2(%arg0: i32) -> (i32, i32, i32) {
    %c0_i32 = arith.constant 0 : i32
    %c0_i32_0 = arith.constant 0 : i32
    %c0_i32_1 = arith.constant 0 : i32
    return %arg0, %c0_i32, %c0_i32_0 : i32, i32, i32
  }
}

</mosaic_0001>

<bundles_post_ra>
// kernel: tpu_custom_call.1
= control target key start
LH: loop header
LB: loop body
LE: loop exit
PB: predicated region body
PF: predicated region fallthrough
CT: control target
= control target key end

     0   :  { %7 = vsyncpa [#allocation3], 0  ;;  %s349_s0 = inlined_call_operand.hbm [shape: f32[8,512], index: 0, kind: input, shape index: {}]   ;;  %s350_s1 = inlined_call_operand.hbm [shape: f32[8,512], index: 1, kind: input, shape index: {}]   ;;  %s351_s2 = inlined_call_operand.hbm [shape: f32[1,8,512], index: 2, kind: output, shape index: {}]  }
   0x1   :  { %8 = vsyncpa [#allocation6], 0 }
   0x2   :  { %9 = vsyncpa [#allocation4], 0  ;;  %s295_s9 = smov [#allocation2]   ;;  %s296_s11 = smov [#allocation5]  }
   0x3   :  { %s16_s10 = sshll.u32 %s295_s9, 4  ;;  %s26_s12 = sshll.u32 %s296_s11, 4  ;;  %s17_s10 = int_to_ptr.vmem [resolvable:$true] %s16_s10  ;;  %s27_s12 = int_to_ptr.vmem [resolvable:$true] %s26_s12 }
   0x4   :  { %s223_s15 = scalar_lea.hbm %s349_s0, 512 }
   0x5   :  { %p224_p0 = scmp.ne.s32.totalorder %s349_s0, %s223_s15  ;;  %p227_p1 = scmp.lt.u32.totalorder %s223_s15, %s349_s0 }
   0x7   :  { %p229_p2 = pnand %p227_p1, %p224_p0 }
   0x9   :  { %232 = shalt.err (!%p229_p2)
}
   0xa   :  { %s233_s20 = scalar_lea.vmem %s17_s10, 512  ;;  %p238_p4 = scmp.lt.s32.totalorder %s17_s10, %s17_s10 }
   0xb   :  { %p234_p3 = scmp.ne.s32.totalorder %s17_s10, %s233_s20  ;;  %p239_p5 = scmp.lt.s32.totalorder %s233_s20, %s233_s20 }
   0xd   :  { %p240_p6 = por %p239_p5, %p238_p4 }
   0xf   :  { %p241_p7 = pnand %p240_p6, %p234_p3 }
  0x11   :  { %244 = shalt.err (!%p241_p7)
}
  0x12   :  { %19 = dma.hbm_to_vmem [thread:$0]  %s349_s0, 512, %s17_s10, [#allocation3]  }
  0x13   :  { %s245_s25 = scalar_lea.hbm %s350_s1, 512 }
  0x14   :  { %p246_p8 = scmp.ne.s32.totalorder %s350_s1, %s245_s25  ;;  %p249_p9 = scmp.lt.u32.totalorder %s245_s25, %s350_s1 }
  0x16   :  { %p251_p10 = pnand %p249_p9, %p246_p8 }
  0x18   :  { %254 = shalt.err (!%p251_p10)
}
  0x19   :  { %s255_s30 = scalar_lea.vmem %s27_s12, 512  ;;  %p260_p12 = scmp.lt.s32.totalorder %s27_s12, %s27_s12 }
  0x1a   :  { %p256_p11 = scmp.ne.s32.totalorder %s27_s12, %s255_s30  ;;  %p261_p13 = scmp.lt.s32.totalorder %s255_s30, %s255_s30 }
  0x1c   :  { %p262_p0 = por %p261_p13, %p260_p12 }
  0x1e   :  { %p263_p1 = pnand %p262_p0, %p256_p11 }
  0x20   :  { %266 = shalt.err (!%p263_p1)
}
  0x21   :  { %29 = dma.hbm_to_vmem [thread:$0]  %s350_s1, 512, %s27_s12, [#allocation6]  }
  0x22   :  { %289 = dma.done.wait [#allocation3], 512  }
  0x23   :  { %290 = vsyncadd [#allocation3], 4294966784 }
  0x24   :  { %291 = dma.done.wait [#allocation6], 512  }
  0x25   :  { %292 = vsyncadd [#allocation6], 4294966784  ;;  %v36_v0 = vld [vmem:[#allocation2] sm:$0xff]  ;;  %v37_v1 = vld [vmem:[#allocation2 + $0x8] sm:$0xff]  ;;  %v140_v28 = vlaneseq  ;;  %s297_s1 = smov [#allocation7]  }
  0x26   :  { %v184_v2 = vmul.f32 -1.442695, %v36_v0  ;;  %v185_v3 = vmul.f32 -1.442695, %v37_v1  ;;  %v38_v4 = vld [vmem:[#allocation2 + $0x10] sm:$0xff]  ;;  %v39_v5 = vld [vmem:[#allocation2 + $0x18] sm:$0xff] }
  0x27   :  { %v186_v6 = vmul.f32 -1.442695, %v38_v4  ;;  %v187_v7 = vmul.f32 -1.442695, %v39_v5  ;;  %v40_v32 = vld [vmem:[#allocation5] sm:$0xff]  ;;  %v41_v34 = vld [vmem:[#allocation5 + $0x8] sm:$0xff] }
  0x28   :  { %191 = vpow2.f32 %v184_v2  ;;  %v141_v35 = vshrl.u32 %v140_v28, 7  ;;  %v88_v36 = vsub.f32 1.0, %v40_v32  ;;  %v143_v37 = vand.u32 127, %v140_v28  ;;  %v42_v38 = vld [vmem:[#allocation5 + $0x10] sm:$0xff]  ;;  %v43_v41 = vld [vmem:[#allocation5 + $0x18] sm:$0xff]  ;;  %s174_s4 = sshll.u32 %s297_s1, 4  ;;  %s175_s4 = int_to_ptr.vmem [resolvable:$true] %s174_s4 }
  0x29   :  { %193 = vpow2.f32 %v185_v3  ;;  %v89_v39 = vsub.f32 1.0, %v41_v34  ;;  %v68_v40 = vmul.f32 0.7, %v40_v32  ;;  %v69_v44 = vmul.f32 0.7, %v41_v34  ;;  %s267_s5 = scalar_lea.vmem %s175_s4, 512  ;;  %p272_p3 = scmp.lt.s32.totalorder %s175_s4, %s175_s4 }
  0x2a   :  { %195 = vpow2.f32 %v186_v6  ;;  %v147_v43 = vmul.u32 512, %v141_v35  ;;  %v90_v45 = vsub.f32 1.0, %v42_v38  ;;  %v92_v48 = vmul.f32 0.3, %v88_v36  ;;  %p268_p2 = scmp.ne.s32.totalorder %s175_s4, %s267_s5  ;;  %p273_p4 = scmp.lt.s32.totalorder %s267_s5, %s267_s5 }
  0x2b   :  { %197 = vpow2.f32 %v187_v7  ;;  %v144_v49 = vadd.s32 128, %v143_v37  ;;  %v93_v52 = vmul.f32 0.3, %v89_v39  ;;  %v145_v53 = vadd.s32 256, %v143_v37 }
  0x2c   :  { %v91_v54 = vsub.f32 1.0, %v43_v41  ;;  %v70_v58 = vmul.f32 0.7, %v42_v38  ;;  %v146_v59 = vadd.s32 384, %v143_v37  ;;  %v148_v61 = vadd.s32 %v147_v43, %v143_v37  ;;  %p274_p5 = por %p273_p4, %p272_p3 }
  0x2d   :  { %v94_v0 = vmul.f32 0.3, %v90_v45  ;;  %v149_v3 = vadd.s32 %v147_v43, %v144_v49  ;;  %v71_v5 = vmul.f32 0.7, %v43_v41 }
  0x2e   :  { %vm152_vm0 = vcmp.lt.s32.totalorder %v148_v61, 16  ;;  %p275_p6 = pnand %p274_p5, %p268_p2 }
  0x2f   :  { %vm153_vm1 = vcmp.lt.s32.totalorder %v149_v3, 16 }
  0x32   :  { %v192_v8 = vpop.eup %191 }
  0x33   :  { %v194_v9 = vpop.eup %193  ;;  %v56_v10 = vadd.f32 1.0, %v192_v8 }
  0x34   :  { %v57_v11 = vadd.f32 1.0, %v194_v9  ;;  %v196_v12 = vpop.eup %195  ;;  %v95_v9 = vmul.f32 0.3, %v91_v54 }
  0x35   :  { %199 = vrcp.f32 %v56_v10  ;;  %v198_v13 = vpop.eup %197  ;;  %v58_v14 = vadd.f32 1.0, %v196_v12 }
  0x36   :  { %201 = vrcp.f32 %v57_v11  ;;  %v59_v15 = vadd.f32 1.0, %v198_v13  ;;  %v150_v13 = vadd.s32 %v147_v43, %v145_v53 }
  0x37   :  { %203 = vrcp.f32 %v58_v14 }
  0x38   :  { %205 = vrcp.f32 %v59_v15  ;;  %vm154_vm2 = vcmp.lt.s32.totalorder %v150_v13, 16 }
  0x3f   :  { %v200_v16 = vpop.eup %199 }
  0x40   :  { %v202_v17 = vpop.eup %201  ;;  %v72_v18 = vadd.f32 1e-08, %v200_v16  ;;  %v96_v19 = vsub.f32 1.0, %v200_v16 }
  0x41   :  { %v73_v20 = vadd.f32 1e-08, %v202_v17  ;;  %v97_v21 = vsub.f32 1.0, %v202_v17  ;;  %v204_v22 = vpop.eup %203 }
  0x42   :  { %207 = vlog2.f32 %v72_v18  ;;  %v100_v23 = vadd.f32 1e-08, %v96_v19  ;;  %v206_v24 = vpop.eup %205  ;;  %v74_v26 = vadd.f32 1e-08, %v204_v22  ;;  %v98_v27 = vsub.f32 1.0, %v204_v22 }
  0x43   :  { %209 = vlog2.f32 %v73_v20  ;;  %v101_v25 = vadd.f32 1e-08, %v97_v21  ;;  %v75_v29 = vadd.f32 1e-08, %v206_v24  ;;  %v99_v30 = vsub.f32 1.0, %v206_v24 }
  0x44   :  { %211 = vlog2.f32 %v100_v23  ;;  %v102_v31 = vadd.f32 1e-08, %v98_v27  ;;  %v151_v20 = vadd.s32 %v147_v43, %v146_v59 }
  0x45   :  { %213 = vlog2.f32 %v101_v25  ;;  %v103_v33 = vadd.f32 1e-08, %v99_v30 }
  0x46   :  { %215 = vlog2.f32 %v74_v26  ;;  %vm155_vm3 = vcmp.lt.s32.totalorder %v151_v20, 16 }
  0x47   :  { %217 = vlog2.f32 %v102_v31 }
  0x48   :  { %219 = vlog2.f32 %v75_v29 }
  0x49   :  { %221 = vlog2.f32 %v103_v33 }
  0x4c   :  { %v208_v42 = vpop.eup %207 }
  0x4d   :  { %v210_v46 = vpop.eup %209  ;;  %v77_v47 = vmul.f32 0.6931472, %v208_v42 }
  0x4e   :  { %v212_v50 = vpop.eup %211  ;;  %v79_v51 = vmul.f32 0.6931472, %v210_v46 }
  0x4f   :  { %v214_v55 = vpop.eup %213  ;;  %v84_v56 = vmul.f32 %v77_v47, %v68_v40  ;;  %v105_v57 = vmul.f32 0.6931472, %v212_v50 }
  0x50   :  { %v216_v60 = vpop.eup %215  ;;  %v85_v62 = vmul.f32 %v79_v51, %v69_v44  ;;  %v107_v63 = vmul.f32 0.6931472, %v214_v55 }
  0x51   :  { %v218_v1 = vpop.eup %217  ;;  %v112_v2 = vmul.f32 %v105_v57, %v92_v48  ;;  %v81_v4 = vmul.f32 0.6931472, %v216_v60 }
  0x52   :  { %v220_v6 = vpop.eup %219  ;;  %v113_v7 = vmul.f32 %v107_v63, %v93_v52  ;;  %v109_v8 = vmul.f32 0.6931472, %v218_v1 }
  0x53   :  { %v222_v10 = vpop.eup %221  ;;  %v116_v11 = vadd.f32 %v112_v2, %v84_v56  ;;  %v86_v12 = vmul.f32 %v81_v4, %v70_v58  ;;  %v83_v14 = vmul.f32 0.6931472, %v220_v6 }
  0x54   :  { %v117_v15 = vadd.f32 %v113_v7, %v85_v62  ;;  %v114_v16 = vmul.f32 %v109_v8, %v94_v0  ;;  %v111_v17 = vmul.f32 0.6931472, %v222_v10 }
  0x55   :  { %v120_v18 = vsub.f32 0.0, %v116_v11  ;;  %v87_v19 = vmul.f32 %v83_v14, %v71_v5 }
  0x56   :  { %v121_v21 = vsub.f32 0.0, %v117_v15  ;;  %v118_v22 = vadd.f32 %v114_v16, %v86_v12  ;;  %v115_v23 = vmul.f32 %v111_v17, %v95_v9 }
  0x57   :  { %v156_v24 = vsel %vm152_vm0, %v120_v18, 0.0 }
  0x58   :  { %164 = vst [vmem:[#allocation7] sm:$0xff] %v156_v24  ;;  %v157_v25 = vsel %vm153_vm1, %v121_v21, 0.0  ;;  %v122_v26 = vsub.f32 0.0, %v118_v22  ;;  %v119_v27 = vadd.f32 %v115_v23, %v87_v19 }
  0x59   :  { %165 = vst [vmem:[#allocation7 + $0x8] sm:$0xff] %v157_v25 }
  0x5a   :  { %v158_v28 = vsel %vm154_vm2, %v122_v26, 0.0  ;;  %v123_v29 = vsub.f32 0.0, %v119_v27 }
  0x5b   :  { %166 = vst [vmem:[#allocation7 + $0x10] sm:$0xff] %v158_v28 }
  0x5c   :  { %v159_v30 = vsel %vm155_vm3, %v123_v29, 0.0 }
  0x5d   :  { %167 = vst [vmem:[#allocation7 + $0x18] sm:$0xff] %v159_v30 }
  0x5e   :  { %278 = shalt.err (!%p275_p6)
}
  0x5f   :  { %s279_s8 = scalar_lea.hbm %s351_s2, 512 }
  0x60   :  { %p280_p7 = scmp.ne.s32.totalorder %s351_s2, %s279_s8  ;;  %p283_p8 = scmp.lt.u32.totalorder %s279_s8, %s351_s2 }
  0x62   :  { %p285_p9 = pnand %p283_p8, %p280_p7 }
  0x64   :  { %288 = shalt.err (!%p285_p9)
}
  0x65   :  { %177 = dma.vmem_to_hbm [thread:$0]  %s175_s4, 512, %s351_s2, [#allocation4]  }
  0x66   :  { %293 = dma.done.wait [#allocation4], 512  }
  0x67   :  { %294 = vsyncadd [#allocation4], 4294966784 }
  0x68   :  { %181 = vsyncpa [#allocation3], 1 }
  0x69   :  { %182 = vsyncpa [#allocation6], 1 }
  0x6a   :  { %183 = vsyncpa [#allocation4], 1 }

</bundles_post_ra>
